<compile_context>
chip_gen: v5e
topology: v5e:2x2
jax: 0.10.0
libtpu: 0.0.40
codegen_flags: <defaults>
</compile_context>

<pallas_src>
import jax
import jax.numpy as jnp
from jax.experimental import pallas as pl
from jax.experimental.pallas import tpu as pltpu

EPS = 1e-5  # nn.LayerNorm default


def _round_up(x, m):
    return (x + m - 1) // m * m


def _vmem_budget_bytes():
    phys = 128 * 1024 * 1024
    try:
        info = pltpu.get_tpu_info()
        phys = int(getattr(info, "vmem_capacity_bytes", phys)) or phys
    except Exception:
        pass
    return (phys * 3) // 4  # headroom for compiler-internal scratch / semaphores


def prenorm_kernel(x_ref, g_ref, b_ref, w_ref, wb_ref, o_ref, y_ref):
    # x: (tm, D) rows; gamma/beta: (1, D); w: (D, tn); wb: (1, tn); o: (tm, tn);
    # y_ref: (tm, D) bf16 scratch holding the normalized+affine activations.

    # LayerNorm once per row tile (first j step); reused across all column tiles.
    @pl.when(pl.program_id(1) == 0)
    def _():
        x = x_ref[...].astype(jnp.float32)
        mean = jnp.mean(x, axis=-1, keepdims=True)
        cent = x - mean
        var = jnp.mean(cent * cent, axis=-1, keepdims=True)  # biased (PyTorch)
        xn = cent * jax.lax.rsqrt(var + EPS)
        y = xn * g_ref[...].astype(jnp.float32) + b_ref[...].astype(jnp.float32)
        y_ref[...] = y.astype(y_ref.dtype)

    # fn = Linear(dim, dim): bf16 operands to the MXU, f32 accumulation.
    out = jnp.dot(y_ref[...], w_ref[...], preferred_element_type=jnp.float32)
    out = out + wb_ref[...].astype(jnp.float32)
    o_ref[...] = out.astype(o_ref.dtype)


def prenorm(x, gamma, beta, w, wb, *, tm=None, tn=1024, mxu_dtype=jnp.bfloat16):
    B, N, D = x.shape
    D_out = w.shape[1]
    M = B * N

    x2 = x.reshape(M, D)
    gamma2 = gamma.reshape(1, D)
    beta2 = beta.reshape(1, D)

    x_item = jnp.dtype(x.dtype).itemsize
    out_item = x_item
    w_item = jnp.dtype(mxu_dtype).itemsize

    # Lane-dense output: pad ONLY the Linear output dim (weight cols + bias) to a
    # multiple of 128; LN statistics over the feature dim D are untouched.
    Np = _round_up(D_out, 128)
    w_c = w.astype(mxu_dtype)
    wb2 = wb.reshape(1, D_out)
    if Np != D_out:
        w_c = jnp.pad(w_c, ((0, 0), (0, Np - D_out)))
        wb2 = jnp.pad(wb2, ((0, 0), (0, Np - D_out)))

    budget = _vmem_budget_bytes()

    # Output-column tiling only when the resident bf16 weight slab would blow VMEM.
    if Np <= tn or 2 * D * Np * w_item <= budget // 2:
        tn_eff = Np                      # weight fetched once, stays resident
    else:
        tn_eff = tn
        while Np % tn_eff != 0 and tn_eff > 128:
            tn_eff //= 2

    # Row tile: biggest (<= 512) that fits the VMEM budget, clamped to the input.
    def footprint(tm_):
        return (2 * tm_ * D * x_item          # x tiles (double-buffered)
                + tm_ * D * w_item            # LN scratch (bf16)
                + 2 * tm_ * tn_eff * out_item  # out tiles
                + 2 * D * tn_eff * w_item      # weight slab
                + 2 * (2 * D + tn_eff) * 4)    # gamma / beta / bias

    tm_cap = tm if tm is not None else 512
    tm_cap = min(tm_cap, _round_up(M, 8))
    tm_eff = 8
    for cand in (512, 256, 128, 64, 32, 16, 8):
        if cand <= tm_cap and footprint(cand) <= budget:
            tm_eff = cand
            break

    # Give the row axis at least 2 blocks so both v7x TensorCores get work.
    if pl.cdiv(M, tm_eff) == 1 and M > 8:
        tm_eff = _round_up(pl.cdiv(M, 2), 8)

    grid = (pl.cdiv(M, tm_eff), Np // tn_eff)

    vmem_limit = int(min(budget, max(footprint(tm_eff) + (4 << 20), 32 << 20)))

    # Weight is re-read per row tile only when column tiling is active.
    w_hbm_bytes = (grid[0] if grid[1] > 1 else 1) * D * Np * w_item
    cost = pl.CostEstimate(
        flops=2 * M * D * Np + 10 * M * D,
        transcendentals=M,
        bytes_accessed=(M * D * x_item + w_hbm_bytes + M * Np * out_item
                        + (2 * D + Np) * 4),
    )

    out = pl.pallas_call(
        prenorm_kernel,
        out_shape=jax.ShapeDtypeStruct((M, Np), x.dtype),
        grid_spec=pltpu.PrefetchScalarGridSpec(
            num_scalar_prefetch=0,
            grid=grid,
            in_specs=[
                pl.BlockSpec((tm_eff, D), lambda i, j: (i, 0)),      # x rows
                pl.BlockSpec((1, D), lambda i, j: (0, 0)),           # gamma
                pl.BlockSpec((1, D), lambda i, j: (0, 0)),           # beta
                pl.BlockSpec((D, tn_eff), lambda i, j: (0, j)),      # fn weight cols
                pl.BlockSpec((1, tn_eff), lambda i, j: (0, j)),      # fn bias cols
            ],
            out_specs=pl.BlockSpec((tm_eff, tn_eff), lambda i, j: (i, j)),
            scratch_shapes=[pltpu.VMEM((tm_eff, D), mxu_dtype)],     # LN result
        ),
        compiler_params=pltpu.CompilerParams(
            dimension_semantics=("parallel", "arbitrary"),
            vmem_limit_bytes=vmem_limit),
        cost_estimate=cost,
    )(x2, gamma2, beta2, w_c, wb2)

    if Np != D_out:
        out = out[:, :D_out]
    return out.reshape(B, N, D_out)


def prenorm_ref(x, gamma, beta, w, wb):
    xf = x.astype(jnp.float32)
    mean = jnp.mean(xf, axis=-1, keepdims=True)
    var = jnp.mean((xf - mean) ** 2, axis=-1, keepdims=True)
    xn = (xf - mean) / jnp.sqrt(var + EPS)
    y = xn * gamma + beta
    return (y @ w + wb).astype(x.dtype)


if __name__ == "__main__":
    B, N, D = 2, 8, 32
    key = jax.random.PRNGKey(0)
    kx, kg, kb, kw, kwb = jax.random.split(key, 5)

    x = jax.random.normal(kx, (B, N, D), dtype=jnp.float32)
    # LayerNorm affine params (PyTorch default is ones/zeros; perturb so the
    # affine path is exercised).
    gamma = 1.0 + 0.1 * jax.random.normal(kg, (D,), dtype=jnp.float32)
    beta = 0.1 * jax.random.normal(kb, (D,), dtype=jnp.float32)
    # fn = Linear(D, D) parameters.
    w = 0.05 * jax.random.normal(kw, (D, D), dtype=jnp.float32)
    wb = 0.05 * jax.random.normal(kwb, (D,), dtype=jnp.float32)

    out = prenorm(x, gamma, beta, w, wb)
    out = jax.block_until_ready(out)

    ref = prenorm_ref(x, gamma, beta, w, wb)
    assert out.shape == (B, N, D)
    # bf16 MXU operands -> relaxed tolerance vs the pure-f32 reference.
    assert jnp.allclose(out, ref, atol=2e-2, rtol=2e-2), "mismatch vs reference"
    print("KERNEL_OK")
</pallas_src>

<mosaic_0001>
module attributes {stable_mosaic.version = 11 : i64} {
  func.func @prenorm_kernel(%arg0: i32, %arg1: i32, %arg2: memref<8x32xf32, #tpu.memory_space<vmem>>, %arg3: memref<1x32xf32, #tpu.memory_space<vmem>>, %arg4: memref<1x32xf32, #tpu.memory_space<vmem>>, %arg5: memref<32x128xbf16, #tpu.memory_space<vmem>>, %arg6: memref<1x128xf32, #tpu.memory_space<vmem>>, %arg7: memref<8x128xf32, #tpu.memory_space<vmem>>, %arg8: memref<8x32xbf16, #tpu.memory_space<vmem>>) attributes {dimension_semantics = [#tpu.dimension_semantics<parallel>, #tpu.dimension_semantics<arbitrary>], iteration_bounds = array<i64: 2, 1>, scalar_prefetch = 0 : i64, scratch_operands = 1 : i64, tpu.core_type = #tpu.core_type<tc>, window_params = [{transform_indices = @transform_0, window_bounds = array<i64: 8, 32>}, {pipeline_mode = #tpu.pipeline_mode<synchronous>, transform_indices = @transform_1, window_bounds = array<i64: 1, 32>}, {pipeline_mode = #tpu.pipeline_mode<synchronous>, transform_indices = @transform_2, window_bounds = array<i64: 1, 32>}, {transform_indices = @transform_3, window_bounds = array<i64: 32, 128>}, {transform_indices = @transform_4, window_bounds = array<i64: 1, 128>}, {transform_indices = @transform_5, window_bounds = array<i64: 8, 128>}]} {
    %c0_i32 = arith.constant 0 : i32
    %0 = arith.cmpi eq, %arg1, %c0_i32 : i32
    %1 = arith.extui %0 : i1 to i32
    %c0_i32_0 = arith.constant 0 : i32
    %2 = arith.cmpi ne, %1, %c0_i32_0 : i32
    scf.if %2 {
      %c0_8 = arith.constant 0 : index
      %c0_9 = arith.constant 0 : index
      %10 = vector.load %arg2[%c0_8, %c0_9] : memref<8x32xf32, #tpu.memory_space<vmem>>, vector<8x32xf32>
      %cst_10 = arith.constant dense<0.000000e+00> : vector<8xf32>
      %11 = vector.multi_reduction <add>, %10, %cst_10 [1] : vector<8x32xf32> to vector<8xf32>
      %12 = vector.shape_cast %11 : vector<8xf32> to vector<8x1xf32>
      %cst_11 = arith.constant 3.200000e+01 : f32
      %13 = vector.broadcast %cst_11 : f32 to vector<8x1xf32>
      %14 = arith.divf %12, %13 : vector<8x1xf32>
      %15 = vector.broadcast %14 : vector<8x1xf32> to vector<8x32xf32>
      %16 = arith.subf %10, %15 : vector<8x32xf32>
      %17 = arith.mulf %16, %16 : vector<8x32xf32>
      %cst_12 = arith.constant dense<0.000000e+00> : vector<8xf32>
      %18 = vector.multi_reduction <add>, %17, %cst_12 [1] : vector<8x32xf32> to vector<8xf32>
      %19 = vector.shape_cast %18 : vector<8xf32> to vector<8x1xf32>
      %cst_13 = arith.constant 3.200000e+01 : f32
      %20 = vector.broadcast %cst_13 : f32 to vector<8x1xf32>
      %21 = arith.divf %19, %20 : vector<8x1xf32>
      %cst_14 = arith.constant 9.99999974E-6 : f32
      %22 = vector.broadcast %cst_14 : f32 to vector<8x1xf32>
      %23 = arith.addf %21, %22 : vector<8x1xf32>
      %24 = math.rsqrt %23 : vector<8x1xf32>
      %25 = vector.broadcast %24 : vector<8x1xf32> to vector<8x32xf32>
      %26 = arith.mulf %16, %25 : vector<8x32xf32>
      %c0_15 = arith.constant 0 : index
      %c0_16 = arith.constant 0 : index
      %27 = vector.load %arg3[%c0_15, %c0_16] : memref<1x32xf32, #tpu.memory_space<vmem>>, vector<1x32xf32>
      %28 = vector.broadcast %27 : vector<1x32xf32> to vector<8x32xf32>
      %29 = arith.mulf %26, %28 : vector<8x32xf32>
      %c0_17 = arith.constant 0 : index
      %c0_18 = arith.constant 0 : index
      %30 = vector.load %arg4[%c0_17, %c0_18] : memref<1x32xf32, #tpu.memory_space<vmem>>, vector<1x32xf32>
      %31 = vector.broadcast %30 : vector<1x32xf32> to vector<8x32xf32>
      %32 = arith.addf %29, %31 : vector<8x32xf32>
      %33 = arith.truncf %32 : vector<8x32xf32> to vector<8x32xbf16>
      %c0_19 = arith.constant 0 : index
      %c0_20 = arith.constant 0 : index
      %34 = vector.load %arg8[%c0_19, %c0_20] : memref<8x32xbf16, #tpu.memory_space<vmem>>, vector<8x32xbf16>
      tpu.vector_store %arg8[%c0_19, %c0_20], %33 {strides = array<i32>} : memref<8x32xbf16, #tpu.memory_space<vmem>>, vector<8x32xbf16>,
    } else {
    }
    %c0 = arith.constant 0 : index
    %c0_1 = arith.constant 0 : index
    %3 = vector.load %arg8[%c0, %c0_1] : memref<8x32xbf16, #tpu.memory_space<vmem>>, vector<8x32xbf16>
    %c0_2 = arith.constant 0 : index
    %c0_3 = arith.constant 0 : index
    %4 = vector.load %arg5[%c0_2, %c0_3] : memref<32x128xbf16, #tpu.memory_space<vmem>>, vector<32x128xbf16>
    %cst = arith.constant dense<0.000000e+00> : vector<8x128xf32>
    %5 = tpu.matmul %3, %4, %cst {dimension_numbers = #tpu.dot_dimension_numbers<[1], [0], [0], [1], [0, 0, 1, 1], [], []>} : vector<8x32xbf16>, vector<32x128xbf16>, vector<8x128xf32> -> vector<8x128xf32>
    %c0_4 = arith.constant 0 : index
    %c0_5 = arith.constant 0 : index
    %6 = vector.load %arg6[%c0_4, %c0_5] : memref<1x128xf32, #tpu.memory_space<vmem>>, vector<1x128xf32>
    %7 = vector.broadcast %6 : vector<1x128xf32> to vector<8x128xf32>
    %8 = arith.addf %5, %7 : vector<8x128xf32>
    %c0_6 = arith.constant 0 : index
    %c0_7 = arith.constant 0 : index
    %9 = vector.load %arg7[%c0_6, %c0_7] : memref<8x128xf32, #tpu.memory_space<vmem>>, vector<8x128xf32>
    tpu.vector_store %arg7[%c0_6, %c0_7], %8 {strides = array<i32>} : memref<8x128xf32, #tpu.memory_space<vmem>>, vector<8x128xf32>,
    return
  }
  func.func @transform_0(%arg0: i32, %arg1: i32) -> (i32, i32) {
    %c0_i32 = arith.constant 0 : i32
    %c0_i32_0 = arith.constant 0 : i32
    return %arg0, %c0_i32 : i32, i32
  }
  func.func @transform_1(%arg0: i32, %arg1: i32) -> (i32, i32) {
    %c0_i32 = arith.constant 0 : i32
    %c0_i32_0 = arith.constant 0 : i32
    %c0_i32_1 = arith.constant 0 : i32
    return %c0_i32, %c0_i32_0 : i32, i32
  }
  func.func @transform_2(%arg0: i32, %arg1: i32) -> (i32, i32) {
    %c0_i32 = arith.constant 0 : i32
    %c0_i32_0 = arith.constant 0 : i32
    %c0_i32_1 = arith.constant 0 : i32
    return %c0_i32, %c0_i32_0 : i32, i32
  }
  func.func @transform_3(%arg0: i32, %arg1: i32) -> (i32, i32) {
    %c0_i32 = arith.constant 0 : i32
    %c0_i32_0 = arith.constant 0 : i32
    return %c0_i32, %arg1 : i32, i32
  }
  func.func @transform_4(%arg0: i32, %arg1: i32) -> (i32, i32) {
    %c0_i32 = arith.constant 0 : i32
    %c0_i32_0 = arith.constant 0 : i32
    return %c0_i32, %arg1 : i32, i32
  }
  func.func @transform_5(%arg0: i32, %arg1: i32) -> (i32, i32) {
    %c0_i32 = arith.constant 0 : i32
    return %arg0, %arg1 : i32, i32
  }
}

</mosaic_0001>

<bundles_post_ra>
// kernel: tpu_custom_call.1
= control target key start
LH: loop header
LB: loop body
LE: loop exit
PB: predicated region body
PF: predicated region fallthrough
CT: control target
= control target key end

     0   :  { %10 = vsyncpa [#allocation4], 0  ;;  %s1019_s0 = inlined_call_operand.hbm [shape: f32[16,32], index: 0, kind: input, shape index: {}]   ;;  %s1020_s1 = inlined_call_operand.hbm [shape: f32[1,32], index: 1, kind: input, shape index: {}]   ;;  %s1021_s2 = inlined_call_operand.vmem [shape: f32[1,32], index: 2, kind: input, shape index: {}]   ;;  %s1022_s3 = inlined_call_operand.hbm [shape: bf16[32,128], index: 3, kind: input, shape index: {}]   ;;  %s1023_s4 = inlined_call_operand.vmem [shape: f32[1,128], index: 4, kind: input, shape index: {}]   ;;  %s1024_s5 = inlined_call_operand.hbm [shape: f32[16,128], index: 5, kind: output, shape index: {}]  }
   0x1   :  { %12 = vsyncpa [#allocation4 + $0x1], 0 }
   0x2   :  { %13 = vsyncpa [#allocation7], 0 }
   0x3   :  { %14 = vsyncpa [#allocation5], 0 }
   0x4   :  { %16 = vsyncpa [#allocation5 + $0x1], 0  ;;  %s860_s18 = smov 0   ;;  %s862_s19 = smov 0  }
   0x5   :  { %s864_s20 = smov 0   ;;  %s866_s21 = smov 0  }
   0x6   :  { %s868_s22 = smov 0   ;;  %s870_s23 = smov 0  }
   0x7 LB: > { %s525_s24 = sadd.s32 4294967295, %s823_s23   ;;  %s526_s25 = sadd.s32 4294967294, %s823_s23   ;;  %s823_s23 = sphi %s870_s23, %s22_s23   ;;  %s819_s22 = sphi %s868_s22, %s1034_s22   ;;  %s815_s21 = sphi %s866_s21, %s1033_s21   ;;  %s811_s20 = sphi %s864_s20, %s1032_s20   ;;  %s807_s19 = sphi %s862_s19, %s1031_s19   ;;  %s803_s18 = sphi %s860_s18, %s1030_s18  }
   0x8   : > { %p54_p0 = scmp.ne.s32.totalorder %s807_s19, %s803_s18  ;;  %p896_p1 = scmp.eq.s32.totalorder %s525_s24, 0 }
   0x9   : > { %p180_p2 = scmp.eq.s32.totalorder %s526_s25, 1  ;;  %p527_p4 = scmp.ge.s32.totalorder %s823_s23, 1 }
   0xa   : > { %p902_p3 = por %p896_p1, %p54_p0  ;;  %p187_p6 = scmp.lt.s32.totalorder %s823_s23, 3 }
   0xb   : > { %p907_p5 = por %p180_p2, %p54_p0  ;;  %s199_s6 = sshll.u32 %s1020_s1, 4  ;;  %s200_s6 = int_to_ptr.hbm [resolvable:$true] %s199_s6 }
   0xc   : > { %p915_p7 = pnand %p527_p4, %p187_p6  ;;  %p531_p8 = scmp.ge.s32.totalorder %s823_s23, 2 }
   0xd   : > { %s825_s8 = smov [#allocation6]   ;;  %s215_s12 = sshll.u32 %s1022_s3, 4  ;;  %s216_s12 = int_to_ptr.hbm [resolvable:$true] %s215_s12 }
   0xe   : > { %p566_p9 = pneg %p915_p7  ;;  %s201_s9 = sshll.u32 %s825_s8, 4  ;;  %s202_s9 = int_to_ptr.vmem [resolvable:$true] %s201_s9 }
   0xf   : > { %s826_s13 = smov [#allocation8]   ;;  %s827_s15 = smov 64  }
  0x10   : > { %p567_p10 = pnand %p566_p9, %p896_p1  ;;  %s217_s14 = sshll.u32 %s826_s13, 4  ;;  %s218_s14 = int_to_ptr.vmem [resolvable:$true] %s217_s14 }
  0x11   : > { %s828_s16 = smov 4   ;;  %p174_p11 = scmp.eq.s32.totalorder %s525_s24, 1 }
  0x12   : > { %569 = dma.hbm_to_vmem [thread:$0]  (!%p567_p10), %s200_s6, 16, %s202_s9, [#allocation7]  }
  0x13   : > { %572 = dma.hbm_to_vmem [thread:$0]  (!%p567_p10), %s216_s12, 256, %s218_s14, [#allocation7], %s827_s15, %s827_s15, %s828_s16  }
  0x14   : > { %s34_s17 = sadd.s32 1, %s819_s22  ;;  %s41_s25 = sadd.s32 1, %s811_s20 }
  0x15   : > { %p36_p12 = scmp.ge.s32.totalorder %s34_s17, 2  ;;  %p48_p13 = scmp.ne.s32.totalorder %s811_s20, %s807_s19 }
  0x16   : > { %p49_p0 = scmp.eq.s32.totalorder %s823_s23, 0  ;;  %p583_p4 = scmp.lt.s32.totalorder %s823_s23, 2 }
  0x17   : > { %s1036_s17 = smov (%p36_p12, %s34_s17), 0  ;;  %p936_p2 = por %p174_p11, %p48_p13 }
  0x18   : > { %s38_s30 = ssub.s32 %s819_s22, %s1036_s17  ;;  %s237_s6 = sand.u32 1, %s811_s20  }
  0x19   : > { %p39_p6 = scmp.eq.s32.totalorder %s38_s30, 0  ;;  %p50_p9 = por %p49_p0, %p48_p13 }
  0x1a   : > { %s532_s8 = sshll.u32 %s237_s6, 3  ;;  %s533_s24 = sshll.u32 %s819_s22, 3 }
  0x1b   : > { %s946_s9 = scalar_select %p39_p6, %s811_s20, %s41_s25  }
  0x1c   : > { %s245_s12 = scalar_lea.hbm %s1019_s0, %s533_s24  ;;  %s241_s14 = scalar_lea.vmem [#allocation3], %s532_s8 }
  0x1d   : > { %s247_s13 = sshll.u32 %s245_s12, 4  ;;  %s249_s15 = sshll.u32 %s241_s14, 4  ;;  %s248_s13 = int_to_ptr.hbm [resolvable:$true] %s247_s13  ;;  %s250_s15 = int_to_ptr.vmem [resolvable:$true] %s249_s15 }
  0x1e   : > { %p574_p10 = pnand %p583_p4, %p50_p9  ;;  %s238_s16 = scalar_lea.sflag [#allocation4], %s237_s6 }
  0x1f   : > { %258 = sbr.rel (%p915_p7) target bundleno = 452 (0x1c4), region = 40  ;;  %s956_s25 = sand.u32 (!%p915_p7), 1, %s807_s19  }
  0x20   : > { %576 = dma.hbm_to_vmem [thread:$0]  (!%p574_p10), %s248_s13, 128, %s250_s15, %s238_s16  }
  0x21   : > { %s535_s30 = sshll.u32 (!%p915_p7), %s956_s25, 3  ;;  %s261_s24 = scalar_lea.sflag (!%p915_p7), [#allocation4], %s956_s25 }
  0x22   : > { %s264_s8 = scalar_lea.vmem (!%p915_p7), [#allocation3], %s535_s30 }
  0x24   : > { %790 = dma.done.wait (%p902_p3), %s261_s24, 128  }
  0x25   : > { %792 = vsyncadd (%p902_p3), %s261_s24, 4294967168 }
  0x26   : > { %794 = dma.done.wait (%p896_p1), [#allocation7], 272  }
  0x27   : > { %796 = vsyncadd (%p896_p1), [#allocation7], 4294967024  ;;  %vm314_vm0 = vcmask 261120   ;;  %v313_v0 = vld [vmem:[%s264_s8] sm:$0xff]  ;;  %v829_v2 = vmov 32.0   ;;  %v552_v16 = vld [vmem:[#allocation8] sm:$0xff] }
  0x28   : > { %v315_v1 = vsel %vm314_vm0, %v313_v0, 0.0  ;;  %643 = vrcp.f32 %v829_v2  ;;  %v553_v14 = vld [vmem:[#allocation8 + $0x8] sm:$0xff]  ;;  %v640_v25 = vld [vmem:[#allocation6] ss:$0 sm:$0xff]  ;;  %vm355_vm5 = vcmask 257024   ;;  %s549_s7 = sshll.u32 %s815_s21, 3 }
  0x29   : > { %316 = vadd.xlane.f32.xlu0 %v315_v1  ;;  %388 = vmatpush.bf16.msra.mxu0 %v553_v14  ;;  %v641_v27 = vld [vmem:[%s1021_s2] ss:$0 sm:$0xff]  ;;  %s408_s11 = scalar_lea.hbm %s1024_s5, %s549_s7  ;;  %s304_s14 = scalar_lea.vmem [#allocation9], %s535_s30 }
  0x2a   : > { %v642_v33 = vld [vmem:[%s1023_s4] ss:$0 sm:$0xff]  ;;  %s410_s15 = sshll.u32 %s304_s14, 4  ;;  %s412_s16 = sshll.u32 %s408_s11, 4  ;;  %s411_s15 = int_to_ptr.vmem [resolvable:$true] %s410_s15  ;;  %s413_s16 = int_to_ptr.hbm [resolvable:$true] %s412_s16 }
  0x2b   : > { %s397_s24 = scalar_lea.sflag [#allocation5], %s956_s25  ;;  %s751_s21 = sshra.s32 %s413_s16, 4  ;;  %s752_s21 = int_to_ptr.hbm [resolvable:$true] %s751_s21 }
  0x2c   : > { %s753_s8 = scalar_lea.hbm %s752_s21, 8  ;;  %s757_s7 = scalar_lea.hbm %s1024_s5, 16 }
  0x2d   : > { %389 = vmatpush.bf16.msra.mxu0 %v552_v16  ;;  %p754_p1 = scmp.ne.s32.totalorder %s752_s21, %s753_s8  ;;  %p758_p11 = scmp.lt.s32.totalorder %s752_s21, %s1024_s5 }
  0x2e   : > { %v644_v3 = vpop.eup %643  ;;  %p759_p12 = scmp.lt.s32.totalorder %s757_s7, %s753_s8 }
  0x2f   : > { %v319_v4 = vmul.f32 32.0, %v644_v3  ;;  %vm323_vm1 = vweird.f32 %v644_v3  ;;  %p755_p3 = pnand %p754_p1, %p936_p2 }
  0x30   : > { %p760_p13 = por %p759_p12, %p758_p11 }
  0x31   : > { %v320_v5 = vsub.f32 1.0, %v319_v4  ;;  %p756_p7 = pneg %p755_p3 }
  0x33   : > { %v321_v6 = vmul.f32 %v644_v3, %v320_v5  ;;  %p761_p0 = pnand %p760_p13, %p756_p7 }
  0x35   : > { %v322_v7 = vadd.f32 %v644_v3, %v321_v6 }
  0x37   : > { %v324_v8 = vsel %vm323_vm1, %v644_v3, %v322_v7 }
  0x9c   : > { %v317_v9 = vpop.xlane.xlu0 %316 }
  0x9d   : > { %v325_v10 = vmul.f32 %v324_v8, %v317_v9 }
  0x9f   : > { %v326_v11 = vsub.f32 %v313_v0, %v325_v10 }
  0xa1   : > { %v327_v12 = vmul.f32 %v326_v11, %v326_v11 }
  0xa3   : > { %v328_v13 = vsel %vm314_vm0, %v327_v12, 0.0 }
  0xa4   : > { %329 = vadd.xlane.f32.xlu0 %v328_v13 }
 0x117   : > { %v330_v15 = vpop.xlane.xlu0 %329 }
 0x118   : > { %v331_v17 = vmul.f32 %v330_v15, %v324_v8 }
 0x11a   : > { %v332_v18 = vadd.f32 1e-05, %v331_v17 }
 0x11c   : > { %645 = vrsqrt.f32 %v332_v18  ;;  %vm339_vm3 = vweird.f32 %v332_v18 }
 0x122   : > { %v646_v19 = vpop.eup %645 }
 0x123   : > { %v334_v20 = vmul.f32 %v646_v19, %v332_v18  ;;  %vm340_vm2 = vweird.f32 %v646_v19 }
 0x124   : > { %vm341_vm4 = vmor %vm339_vm3, %vm340_vm2 }
 0x125   : > { %v335_v21 = vmul.f32 %v646_v19, %v334_v20 }
 0x127   : > { %v336_v22 = vmul.f32 0.5, %v335_v21 }
 0x129   : > { %v337_v23 = vsub.f32 1.5, %v336_v22 }
 0x12b   : > { %v338_v24 = vmul.f32 %v646_v19, %v337_v23 }
 0x12d   : > { %v342_v26 = vsel %vm341_vm4, %v646_v19, %v338_v24 }
 0x12e   : > { %v343_v28 = vmul.f32 %v342_v26, %v326_v11 }
 0x130   : > { %v348_v29 = vmul.f32 %v640_v25, %v343_v28 }
 0x132   : > { %v353_v30 = vadd.f32 %v641_v27, %v348_v29 }
 0x134   : > { %v354_v31 = vpack.c.bf16 %v353_v30, %v353_v30 }
 0x136   : > { %356 = vst.msk [vmem:[#allocation2] sm:$0xf] %vm355_vm5, %v354_v31 }
 0x13d   : > { %v357_v32 = vld [vmem:[#allocation2] sm:$0xf] }
 0x13e   : > { %547 = vmatmul.msk.bf16.vlgmr.msra.gmra.mxu0 %vm314_vm0, %v357_v32 }
 0x1bb   : > { %v391_v34 = vpop.f32.mrf.mxu0 }
 0x1bc   : > { %v392_v35 = vadd.f32 %v642_v33, %v391_v34 }
 0x1be   : > { %395 = vst [vmem:[%s304_s14] sm:$0xff] %v392_v35 }
 0x1bf   : > { %764 = shalt.err (!%p761_p0)
}
 0x1c0   : > { %564 = dma.vmem_to_hbm [thread:$0]  (%p936_p2), %s411_s15, 128, %s413_s16, %s397_s24  }
 0x1c3   : > { %v393_v36 = vpop.f32.mrf.mxu0 }
 0x1c4 PF: > { %s424_s25 = sand.u32 1, %s803_s18   ;;  %p578_p4 = pnand %p531_p8, %p907_p5 }
 0x1c5   : > { %s425_s10 = scalar_lea.sflag [#allocation5], %s424_s25 }
 0x1c6   : > { %p579_p6 = pneg %p578_p4 }
 0x1c8   : > { %798 = dma.done.wait (%p579_p6), %s425_s10, 128  }
 0x1c9   : > { %800 = vsyncadd (%p579_p6), %s425_s10, 4294967168  ;;  %s22_s23 = sadd.s32 1, %s823_s23   ;;  %s1030_s18 = smov %s807_s19 }
 0x1ca   : > { %p19_p9 = scmp.ge.s32.totalorder %s22_s23, 4   ;;  %s1031_s19 = smov %s811_s20 }
 0x1cb   : > { %s1032_s20 = smov %s946_s9  ;;  %s1033_s21 = smov %s819_s22 }
 0x1cc   : > { %s1034_s22 = smov %s1036_s17  ;;  %21 = sbr.rel (!%p19_p9) target bundleno = 7 (0x7), region = 101 }
 0x1d1   :  { %431 = vsyncpa [#allocation4], 1 }
 0x1d2   :  { %433 = vsyncpa [#allocation4 + $0x1], 1 }
 0x1d3   :  { %434 = vsyncpa [#allocation7], 1 }
 0x1d4   :  { %435 = vsyncpa [#allocation5], 1 }
 0x1d5   :  { %437 = vsyncpa [#allocation5 + $0x1], 1 }

</bundles_post_ra>
